<compile_context>
chip_gen: v5e
topology: v5e:2x2
jax: 0.10.0
libtpu: 0.0.40
codegen_flags: <defaults>
</compile_context>

<pallas_src>
import functools

import jax
import jax.numpy as jnp
from jax import lax
from jax.experimental import pallas as pl
from jax.experimental.pallas import tpu as pltpu

LEAKY_SLOPE = 0.2
IN_EPS = 1e-5  # nn.InstanceNorm2d default eps

_CPARAMS = pltpu.CompilerParams(
    dimension_semantics=("parallel",),       # batch elements are independent
    vmem_limit_bytes=48 * 1024 * 1024,       # <= v7x physical VMEM (64 MiB)
)


# ---------------------------------------------------------------------------
# Kernels
# ---------------------------------------------------------------------------
def _conv_block_kernel(*refs, wop, cnt, normalize):
    """Conv2d(4, stride=2, pad=1) [+ InstanceNorm2d] + LeakyReLU, 1 batch elem.

    x_ref   : ((Ho+2)*(Wo+1), 4*Cin) bf16  space-to-depth'd zero-padded input
    w_ref   : (4, 4*Cin, Cout)       bf16  tap-group weights, dim0 = 2*dh + dw
    b_ref   : (1, Cout)              f32
    mask_ref: (Ho*(Wo+1), 1)         f32   1.0 on valid columns (normalize only)
    o_ref   : (Ho*(Wo+1), Cout)      f32
    """
    if normalize:
        x_ref, w_ref, b_ref, mask_ref, o_ref = refs
    else:
        x_ref, w_ref, b_ref, o_ref = refs
    mp = o_ref.shape[0]

    # Four MXU matmuls: M = Ho*(Wo+1), K = 4*Cin, N = Cout; f32 accumulation.
    # Tap group (dh, dw) reads rows [dh*(Wo+1)+dw, dh*(Wo+1)+dw+mp).
    acc = jnp.dot(x_ref[pl.ds(0, mp), :], w_ref[0],
                  preferred_element_type=jnp.float32)
    acc = acc + jnp.dot(x_ref[pl.ds(1, mp), :], w_ref[1],
                        preferred_element_type=jnp.float32)
    acc = acc + jnp.dot(x_ref[pl.ds(wop, mp), :], w_ref[2],
                        preferred_element_type=jnp.float32)
    acc = acc + jnp.dot(x_ref[pl.ds(wop + 1, mp), :], w_ref[3],
                        preferred_element_type=jnp.float32)
    acc = acc + b_ref[...]

    if normalize:
        # InstanceNorm2d: per-(n, c) stats over the Ho*Wo valid positions only
        # (the garbage column from the flattening trick is masked out).
        m = mask_ref[...]
        inv = 1.0 / cnt
        mean = jnp.sum(acc * m, axis=0, keepdims=True) * inv
        d = acc - mean
        var = jnp.sum(d * d * m, axis=0, keepdims=True) * inv
        acc = d * lax.rsqrt(var + IN_EPS)

    o_ref[...] = jnp.where(acc >= 0, acc, LEAKY_SLOPE * acc)   # LeakyReLU(0.2)


def _final_conv_kernel(x_ref, w_ref, b_ref, o_ref, *, wo):
    """ZeroPad2d((1,0,1,0)) + Conv2d(512, 1, 4, padding=1), 1 batch element.

    x_ref: ((Ho+3)*Wo, 4*Cin) bf16  kw taps folded into channels by the wrapper
    w_ref: (4, 4*Cin, 1)      bf16  dim0 = kh
    b_ref: (1, 1) f32               o_ref: (Ho*Wo, 1) f32
    """
    mp = o_ref.shape[0]
    acc = jnp.dot(x_ref[pl.ds(0, mp), :], w_ref[0],
                  preferred_element_type=jnp.float32)
    acc = acc + jnp.dot(x_ref[pl.ds(wo, mp), :], w_ref[1],
                        preferred_element_type=jnp.float32)
    acc = acc + jnp.dot(x_ref[pl.ds(2 * wo, mp), :], w_ref[2],
                        preferred_element_type=jnp.float32)
    acc = acc + jnp.dot(x_ref[pl.ds(3 * wo, mp), :], w_ref[3],
                        preferred_element_type=jnp.float32)
    o_ref[...] = acc + b_ref[...]


# ---------------------------------------------------------------------------
# Wrappers (layout glue + pallas_call plumbing)
# ---------------------------------------------------------------------------
def conv_block(x, w, b, *, normalize):
    """x: (N, H, W, Cin) f32 NHWC; w: (4, 4, Cin, Cout) HWIO; b: (Cout,)."""
    n, h, wd, cin = x.shape
    cout = w.shape[-1]
    ho, wo = h // 2, wd // 2
    wop = wo + 1                      # +1 garbage column from the flattening
    mx = (ho + 2) * wop               # flattened input rows
    mp = ho * wop                     # flattened output rows (incl. garbage col)
    k4 = 4 * cin

    # Zero-pad so the padded spatial dims are exactly 2*(ho+2) x 2*(wo+1); the
    # extra bottom/right rows are only ever read by the garbage column.
    pad_b = 2 * (ho + 2) - 1 - h
    pad_r = 2 * wop - 1 - wd
    xp = jnp.pad(x, ((0, 0), (1, pad_b), (1, pad_r), (0, 0)))
    # Space-to-depth: fold the 2x2 stride phases into channels, flatten spatial.
    xc = xp.reshape(n, ho + 2, 2, wop, 2, cin)
    xc = xc.transpose(0, 1, 3, 2, 4, 5).reshape(n, mx, k4).astype(jnp.bfloat16)

    # Weights: group the 4x4 taps into 4 (dh, dw) groups; within a group the
    # (ph, pw, cin) channel order matches the space-to-depth order above.
    wc = w.reshape(2, 2, 2, 2, cin, cout).transpose(0, 2, 1, 3, 4, 5)
    wc = wc.reshape(4, k4, cout).astype(jnp.bfloat16)
    bc = b.astype(jnp.float32).reshape(1, cout)

    kernel = functools.partial(_conv_block_kernel, wop=wop,
                               cnt=float(ho * wo), normalize=normalize)
    in_specs = [
        pl.BlockSpec((None, mx, k4), lambda i: (i, 0, 0)),
        pl.BlockSpec((4, k4, cout), lambda i: (0, 0, 0)),
        pl.BlockSpec((1, cout), lambda i: (0, 0)),
    ]
    args = [xc, wc, bc]
    if normalize:
        col = jnp.arange(mp, dtype=jnp.int32) % wop
        mask = (col < wo).astype(jnp.float32).reshape(mp, 1)
        in_specs.append(pl.BlockSpec((mp, 1), lambda i: (0, 0)))
        args.append(mask)

    out = pl.pallas_call(
        kernel,
        out_shape=jax.ShapeDtypeStruct((n, mp, cout), jnp.float32),
        grid=(n,),
        in_specs=in_specs,
        out_specs=pl.BlockSpec((None, mp, cout), lambda i: (i, 0, 0)),
        compiler_params=_CPARAMS,
    )(*args)
    # Drop the garbage column, restore NHWC.
    return out.reshape(n, ho, wop, cout)[:, :, :wo, :]


def final_conv(x, w, b):
    """x: (N, Ho, Wo, 512) f32; w: (4, 4, 512, 1); b: (1,)."""
    n, ho, wo, cin = x.shape
    k4 = 4 * cin
    mp = ho * wo
    # ZeroPad2d((1,0,1,0)) then Conv2d(pad=1): effective padding ((2,1),(2,1)).
    xp = jnp.pad(x, ((0, 0), (2, 1), (2, 1), (0, 0)))            # (n, ho+3, wo+3, cin)
    # Fold the 4 kw taps into channels; flatten spatial -> ((ho+3)*wo, 4*cin).
    xcat = jnp.stack([xp[:, :, kw:kw + wo, :] for kw in range(4)], axis=3)
    xcat = xcat.reshape(n, (ho + 3) * wo, k4).astype(jnp.bfloat16)
    wc = w.reshape(4, k4, 1).astype(jnp.bfloat16)                # dim0 = kh
    bc = b.astype(jnp.float32).reshape(1, 1)

    kernel = functools.partial(_final_conv_kernel, wo=wo)
    out = pl.pallas_call(
        kernel,
        out_shape=jax.ShapeDtypeStruct((n, mp, 1), jnp.float32),
        grid=(n,),
        in_specs=[
            pl.BlockSpec((None, (ho + 3) * wo, k4), lambda i: (i, 0, 0)),
            pl.BlockSpec((4, k4, 1), lambda i: (0, 0, 0)),
            pl.BlockSpec((1, 1), lambda i: (0, 0)),
        ],
        out_specs=pl.BlockSpec((None, mp, 1), lambda i: (i, 0, 0)),
        compiler_params=_CPARAMS,
    )(xcat, wc, bc)
    return out.reshape(n, ho, wo, 1)


def discriminator_forward(img_nchw, block_params, final_params):
    """Forward pass of the PyTorch Discriminator. Input NCHW, output NCHW."""
    x = jnp.transpose(img_nchw, (0, 2, 3, 1))                    # NCHW -> NHWC
    for w, b, norm in block_params:
        x = conv_block(x, w, b, normalize=norm)
    wf, bf = final_params
    y = final_conv(x, wf, bf)
    return jnp.transpose(y, (0, 3, 1, 2))                        # (N, 1, H//16, W//16)


# ---------------------------------------------------------------------------
# Deterministic parameter init (shapes from the module's __init__)
# ---------------------------------------------------------------------------
def init_params(key, in_channels):
    layer_defs = [(in_channels, 64, False), (64, 128, True),
                  (128, 256, True), (256, 512, True)]
    block_params = []
    for cin, cout, norm in layer_defs:
        key, kw, kb = jax.random.split(key, 3)
        bound = float(1.0 / (cin * 16) ** 0.5)                   # PyTorch conv default
        w = jax.random.uniform(kw, (4, 4, cin, cout), jnp.float32, -bound, bound)
        b = jax.random.uniform(kb, (cout,), jnp.float32, -bound, bound)
        block_params.append((w, b, norm))
    key, kw, kb = jax.random.split(key, 3)
    bound = float(1.0 / (512 * 16) ** 0.5)
    wf = jax.random.uniform(kw, (4, 4, 512, 1), jnp.float32, -bound, bound)
    bf = jax.random.uniform(kb, (1,), jnp.float32, -bound, bound)
    return block_params, (wf, bf)


# ---------------------------------------------------------------------------
# Pure-JAX reference (same math; operands bf16-rounded like the kernel, f32
# accumulation via Precision.HIGHEST) for a correctness check
# ---------------------------------------------------------------------------
def reference_forward(img_nchw, block_params, final_params):
    dn = ("NHWC", "HWIO", "NHWC")
    rd = lambda a: a.astype(jnp.bfloat16).astype(jnp.float32)
    x = jnp.transpose(img_nchw, (0, 2, 3, 1))
    for w, b, norm in block_params:
        x = lax.conv_general_dilated(rd(x), rd(w), (2, 2), ((1, 1), (1, 1)),
                                     dimension_numbers=dn,
                                     precision=lax.Precision.HIGHEST) + b
        if norm:
            m = jnp.mean(x, axis=(1, 2), keepdims=True)
            v = jnp.mean((x - m) ** 2, axis=(1, 2), keepdims=True)
            x = (x - m) * lax.rsqrt(v + IN_EPS)
        x = jnp.where(x >= 0, x, LEAKY_SLOPE * x)
    wf, bfin = final_params
    x = lax.conv_general_dilated(rd(x), rd(wf), (1, 1), ((2, 1), (2, 1)),
                                 dimension_numbers=dn,
                                 precision=lax.Precision.HIGHEST) + bfin
    return jnp.transpose(x, (0, 3, 1, 2))


if __name__ == "__main__":
    key = jax.random.PRNGKey(0)
    k_img, k_par = jax.random.split(key)

    # Small shapes consistent with the module: H, W divisible by 2**4.
    N, C, H, W = 2, 3, 32, 32
    img = jax.random.normal(k_img, (N, C, H, W), jnp.float32)    # NCHW like PyTorch
    block_params, final_params = init_params(k_par, C)

    out = jax.block_until_ready(
        discriminator_forward(img, block_params, final_params))
    assert out.shape == (N, 1, H // 2 ** 4, W // 2 ** 4), out.shape  # self.output_shape

    ref = jax.block_until_ready(
        reference_forward(img, block_params, final_params))
    rel_err = float(jnp.max(jnp.abs(out - ref)) / (jnp.max(jnp.abs(ref)) + 1e-8))
    assert rel_err < 2e-2, f"mismatch vs reference: rel_err={rel_err}"

    print("KERNEL_OK")
</pallas_src>

<mosaic_0001>
module attributes {stable_mosaic.version = 11 : i64} {
  func.func @_conv_block_kernel(%arg0: i32, %arg1: memref<1x306x12xbf16, #tpu.memory_space<vmem>>, %arg2: memref<4x12x64xbf16, #tpu.memory_space<vmem>>, %arg3: memref<1x64xf32, #tpu.memory_space<vmem>>, %arg4: memref<1x272x64xf32, #tpu.memory_space<vmem>>) attributes {dimension_semantics = [#tpu.dimension_semantics<parallel>], iteration_bounds = array<i64: 2>, scalar_prefetch = 0 : i64, scratch_operands = 0 : i64, tpu.core_type = #tpu.core_type<tc>, window_params = [{transform_indices = @transform_0, window_bounds = array<i64: 1, 306, 12>}, {pipeline_mode = #tpu.pipeline_mode<synchronous>, transform_indices = @transform_1, window_bounds = array<i64: 4, 12, 64>}, {pipeline_mode = #tpu.pipeline_mode<synchronous>, transform_indices = @transform_2, window_bounds = array<i64: 1, 64>}, {transform_indices = @transform_3, window_bounds = array<i64: 1, 272, 64>}]} {
    %c0 = arith.constant 0 : index
    %c0_0 = arith.constant 0 : index
    %c0_1 = arith.constant 0 : index
    %0 = vector.load %arg1[%c0, %c0_0, %c0_1] : memref<1x306x12xbf16, #tpu.memory_space<vmem>>, vector<1x272x12xbf16>
    %1 = vector.shape_cast %0 : vector<1x272x12xbf16> to vector<272x12xbf16>
    %c0_2 = arith.constant 0 : index
    %c0_3 = arith.constant 0 : index
    %c0_4 = arith.constant 0 : index
    %2 = vector.load %arg2[%c0_2, %c0_3, %c0_4] : memref<4x12x64xbf16, #tpu.memory_space<vmem>>, vector<1x12x64xbf16>
    %3 = vector.shape_cast %2 : vector<1x12x64xbf16> to vector<12x64xbf16>
    %cst = arith.constant dense<0.000000e+00> : vector<272x64xf32>
    %4 = tpu.matmul %1, %3, %cst {dimension_numbers = #tpu.dot_dimension_numbers<[1], [0], [0], [1], [0, 0, 1, 1], [], []>} : vector<272x12xbf16>, vector<12x64xbf16>, vector<272x64xf32> -> vector<272x64xf32>
    %c0_5 = arith.constant 0 : index
    %c1 = arith.constant 1 : index
    %c0_6 = arith.constant 0 : index
    %5 = vector.load %arg1[%c0_5, %c1, %c0_6] : memref<1x306x12xbf16, #tpu.memory_space<vmem>>, vector<1x272x12xbf16>
    %6 = vector.shape_cast %5 : vector<1x272x12xbf16> to vector<272x12xbf16>
    %c1_7 = arith.constant 1 : index
    %c0_8 = arith.constant 0 : index
    %c0_9 = arith.constant 0 : index
    %7 = vector.load %arg2[%c1_7, %c0_8, %c0_9] : memref<4x12x64xbf16, #tpu.memory_space<vmem>>, vector<1x12x64xbf16>
    %8 = vector.shape_cast %7 : vector<1x12x64xbf16> to vector<12x64xbf16>
    %cst_10 = arith.constant dense<0.000000e+00> : vector<272x64xf32>
    %9 = tpu.matmul %6, %8, %cst_10 {dimension_numbers = #tpu.dot_dimension_numbers<[1], [0], [0], [1], [0, 0, 1, 1], [], []>} : vector<272x12xbf16>, vector<12x64xbf16>, vector<272x64xf32> -> vector<272x64xf32>
    %10 = arith.addf %4, %9 : vector<272x64xf32>
    %c0_11 = arith.constant 0 : index
    %c17 = arith.constant 17 : index
    %c0_12 = arith.constant 0 : index
    %11 = vector.load %arg1[%c0_11, %c17, %c0_12] : memref<1x306x12xbf16, #tpu.memory_space<vmem>>, vector<1x272x12xbf16>
    %12 = vector.shape_cast %11 : vector<1x272x12xbf16> to vector<272x12xbf16>
    %c2 = arith.constant 2 : index
    %c0_13 = arith.constant 0 : index
    %c0_14 = arith.constant 0 : index
    %13 = vector.load %arg2[%c2, %c0_13, %c0_14] : memref<4x12x64xbf16, #tpu.memory_space<vmem>>, vector<1x12x64xbf16>
    %14 = vector.shape_cast %13 : vector<1x12x64xbf16> to vector<12x64xbf16>
    %cst_15 = arith.constant dense<0.000000e+00> : vector<272x64xf32>
    %15 = tpu.matmul %12, %14, %cst_15 {dimension_numbers = #tpu.dot_dimension_numbers<[1], [0], [0], [1], [0, 0, 1, 1], [], []>} : vector<272x12xbf16>, vector<12x64xbf16>, vector<272x64xf32> -> vector<272x64xf32>
    %16 = arith.addf %10, %15 : vector<272x64xf32>
    %c0_16 = arith.constant 0 : index
    %c18 = arith.constant 18 : index
    %c0_17 = arith.constant 0 : index
    %17 = vector.load %arg1[%c0_16, %c18, %c0_17] : memref<1x306x12xbf16, #tpu.memory_space<vmem>>, vector<1x272x12xbf16>
    %18 = vector.shape_cast %17 : vector<1x272x12xbf16> to vector<272x12xbf16>
    %c3 = arith.constant 3 : index
    %c0_18 = arith.constant 0 : index
    %c0_19 = arith.constant 0 : index
    %19 = vector.load %arg2[%c3, %c0_18, %c0_19] : memref<4x12x64xbf16, #tpu.memory_space<vmem>>, vector<1x12x64xbf16>
    %20 = vector.shape_cast %19 : vector<1x12x64xbf16> to vector<12x64xbf16>
    %cst_20 = arith.constant dense<0.000000e+00> : vector<272x64xf32>
    %21 = tpu.matmul %18, %20, %cst_20 {dimension_numbers = #tpu.dot_dimension_numbers<[1], [0], [0], [1], [0, 0, 1, 1], [], []>} : vector<272x12xbf16>, vector<12x64xbf16>, vector<272x64xf32> -> vector<272x64xf32>
    %22 = arith.addf %16, %21 : vector<272x64xf32>
    %c0_21 = arith.constant 0 : index
    %c0_22 = arith.constant 0 : index
    %23 = vector.load %arg3[%c0_21, %c0_22] : memref<1x64xf32, #tpu.memory_space<vmem>>, vector<1x64xf32>
    %24 = vector.broadcast %23 : vector<1x64xf32> to vector<272x64xf32>
    %25 = arith.addf %22, %24 : vector<272x64xf32>
    %cst_23 = arith.constant 0.000000e+00 : f32
    %26 = vector.broadcast %cst_23 : f32 to vector<272x64xf32>
    %27 = arith.cmpf oge, %25, %26 : vector<272x64xf32>
    %cst_24 = arith.constant 2.000000e-01 : f32
    %28 = vector.broadcast %cst_24 : f32 to vector<272x64xf32>
    %29 = arith.mulf %28, %25 : vector<272x64xf32>
    %30 = arith.select %27, %25, %29 : vector<272x64xi1>, vector<272x64xf32>
    %c0_25 = arith.constant 0 : index
    %c0_26 = arith.constant 0 : index
    %c0_27 = arith.constant 0 : index
    %31 = vector.load %arg4[%c0_25, %c0_26, %c0_27] : memref<1x272x64xf32, #tpu.memory_space<vmem>>, vector<1x272x64xf32>
    %32 = vector.shape_cast %31 : vector<1x272x64xf32> to vector<272x64xf32>
    %33 = vector.shape_cast %30 : vector<272x64xf32> to vector<1x272x64xf32>
    tpu.vector_store %arg4[%c0_25, %c0_26, %c0_27], %33 {strides = array<i32>} : memref<1x272x64xf32, #tpu.memory_space<vmem>>, vector<1x272x64xf32>,
    return
  }
  func.func @transform_0(%arg0: i32) -> (i32, i32, i32) {
    %c0_i32 = arith.constant 0 : i32
    %c0_i32_0 = arith.constant 0 : i32
    %c0_i32_1 = arith.constant 0 : i32
    return %arg0, %c0_i32, %c0_i32_0 : i32, i32, i32
  }
  func.func @transform_1(%arg0: i32) -> (i32, i32, i32) {
    %c0_i32 = arith.constant 0 : i32
    %c0_i32_0 = arith.constant 0 : i32
    %c0_i32_1 = arith.constant 0 : i32
    %c0_i32_2 = arith.constant 0 : i32
    return %c0_i32, %c0_i32_0, %c0_i32_1 : i32, i32, i32
  }
  func.func @transform_2(%arg0: i32) -> (i32, i32) {
    %c0_i32 = arith.constant 0 : i32
    %c0_i32_0 = arith.constant 0 : i32
    %c0_i32_1 = arith.constant 0 : i32
    return %c0_i32, %c0_i32_0 : i32, i32
  }
  func.func @transform_3(%arg0: i32) -> (i32, i32, i32) {
    %c0_i32 = arith.constant 0 : i32
    %c0_i32_0 = arith.constant 0 : i32
    %c0_i32_1 = arith.constant 0 : i32
    return %arg0, %c0_i32, %c0_i32_0 : i32, i32, i32
  }
}

</mosaic_0001>

<bundles_post_ra>
// kernel: tpu_custom_call.1
= control target key start
LH: loop header
LB: loop body
LE: loop exit
PB: predicated region body
PF: predicated region fallthrough
CT: control target
= control target key end

     0   :  { %s1961_s12 = smov 0   ;;  %s2317_s0 = inlined_call_operand.vmem [shape: bf16[2,306,12], index: 0, kind: input, shape index: {}]   ;;  %s2318_s1 = inlined_call_operand.vmem [shape: bf16[4,12,64], index: 1, kind: input, shape index: {}]   ;;  %s2319_s2 = inlined_call_operand.vmem [shape: f32[1,64], index: 2, kind: input, shape index: {}]   ;;  %s2320_s3 = inlined_call_operand.vmem [shape: f32[2,272,64], index: 3, kind: output, shape index: {}]  }
   0x1 LB: > { %s1645_s13 = sadd.s32 4294967295, %s1939_s12   ;;  %p1649_p0 = scmp.ge.s32.totalorder %s1939_s12, 1  ;;  %s1939_s12 = sphi %s1961_s12, %s13_s12  }
   0x2   : > { %p137_p1 = scmp.lt.s32.totalorder %s1939_s12, 3 }
   0x4   : > { %p138_p2 = pnand %p1649_p0, %p137_p1 }
   0x5   : > { %p161_p3 = scmp.lt.s32.totalorder (!%p138_p2), %s1645_s13, 1 }
   0x6   : > { %141 = sbr.rel (%p138_p2) target bundleno = 433 (0x1b1), region = 32 }
   0xb   : > { %v1745_v0 = vld [vmem:[%s2318_s1] sm:$0xf]  ;;  %v1893_v1 = vld [vmem:[%s2318_s1] sm:$0x30]  ;;  %vm498_vm0 = vcmask 1045504   ;;  %s2322_s13 = smov (!%p161_p3, %s1645_s13), 1 }
   0xc   : > { %v1746_v2 = vor.u32 %v1893_v1, %v1745_v0  ;;  %v1855_v3 = vld [vmem:[%s2318_s1 + $0x18] sm:$0xf]  ;;  %v1912_v4 = vld [vmem:[%s2318_s1 + $0x18] sm:$0x30]  ;;  %v1832_v6 = vld [vmem:[%s2318_s1 + $0x10] sm:$0xf] }
   0xd   : > { %v1856_v5 = vor.u32 %v1912_v4, %v1855_v3  ;;  %v1911_v7 = vld [vmem:[%s2318_s1 + $0x10] sm:$0x30]  ;;  %v1724_v10 = vld [vmem:[%s2318_s1 + $0x8] sm:$0xf]  ;;  %v1894_v11 = vld [vmem:[%s2318_s1 + $0x8] sm:$0x30] }
   0xe   : > { %v636_v8 = vsel %vm498_vm0, %v1746_v2, 0  ;;  %v1833_v9 = vor.u32 %v1911_v7, %v1832_v6  ;;  %s1921_s30 = smul.u32 156, %s2322_s13  ;;  %v1725_v13 = vor.u32 %v1894_v11, %v1724_v10  ;;  %vm446_vm1 = vcmask 97280  }
   0xf   : > { %645 = vmatpush.bf16.msra.mxu1 %v636_v8  ;;  %v1285_v12 = vsel %vm498_vm0, %v1856_v5, 0  ;;  %vm1192_vm2 = vcmask 1046528   ;;  %vm300_vm3 = vsmask.f32 7424  ;;  %s1922_s9 = smul.u32 272, %s2322_s13  ;;  %vm1555_vm4 = vcmask 523264  }
  0x10   : > { %1294 = vmatpush.bf16.msra.mxu3 %v1285_v12  ;;  %v1055_v14 = vsel %vm498_vm0, %v1833_v9, 0  ;;  %s2002_s6 = scalar_lea.vmem %s2317_s0, %s1921_s30  ;;  %v500_v15 = vsel %vm498_vm0, %v1725_v13, 0 }
  0x11   : > { %1064 = vmatpush.bf16.msra.mxu2 %v1055_v14  ;;  %v1876_v16 = vld [vmem:[%s2002_s6] sm:$0xff]  ;;  %v1918_v17 = vld [vmem:[%s2002_s6 + $0x8] sm:$0xf0]  ;;  %v1895_v18 = vld [vmem:[%s2002_s6 + $0x10] sm:$0xff]  ;;  %509 = vmatpush.bf16.msra.mxu0 %v500_v15  ;;  %s2107_s14 = scalar_lea.vmem %s2320_s3, %s1922_s9 }
  0x12   : > { %v1919_v19 = vld [vmem:[%s2002_s6 + $0x8] sm:$0xe]  ;;  %v304_v22 = vshll.u32 %v1876_v16, 16  ;;  %1747 = vmatmul.msk.bf16.vlgmr.msra.gmra.mxu1 %vm446_vm1, %v1876_v16  ;;  %v1194_v24 = vrot.slane %v1895_v18, 1  ;;  %v866_v27 = vshll.u32 %v1895_v18, 16  ;;  %v302_v28 = vshrl.u32 %v1876_v16, 16 }
  0x13   : > { %v1917_v20 = vld [vmem:[%s2002_s6 + $0x8] sm:$0xff]   ;;  %v1920_v23 = vor.u32 %v1919_v19, %v1918_v17  ;;  %v1878_v40 = vld [vmem:[%s2002_s6 + $0x10] sm:$0xff]  ;;  %v1896_v41 = vld [vmem:[%s2002_s6 + $0x18] sm:$0xff]  ;;  %v870_v44 = vshrl.u32 %v1895_v18, 16 }
  0x14   : > { %v1877_v21 = vld [vmem:[%s2002_s6 + $0x8] sm:$0xff]  ;;  %v859_v25 = vshrl.u32 %v1917_v20, 16  ;;  %v861_v26 = vshll.u32 %v1917_v20, 16  ;;  %v306_v31 = vrot.slane %v304_v22, 1  ;;  %v868_v33 = vrot.slane %v866_v27, 1  ;;  %v1879_v54 = vld [vmem:[%s2002_s6 + $0x18] sm:$0xff] }
  0x15   : > { %v309_v29 = vshll.u32 %v1877_v21, 16  ;;  %v1193_v30 = vrot.slane %v1920_v23, 1  ;;  %v313_v42 = vshrl.u32 %v1877_v21, 16  ;;  %v317_v43 = vshll.u32 %v1878_v40, 16  ;;  %v1897_v55 = vld [vmem:[%s2002_s6 + $0x20] sm:$0xff]  ;;  %v1898_v5 = vld [vmem:[%s2002_s6 + $0x28] sm:$0xff] }
  0x16   : > { %v863_v32 = vrot.slane %v861_v26, 1  ;;  %v307_v36 = vor.u32 %v306_v31, %v302_v28  ;;  %v874_v45 = vshll.u32 %v1896_v41, 16  ;;  %v1196_v46 = vrot.slane %v1896_v41, 1  ;;  %v1880_v4 = vld [vmem:[%s2002_s6 + $0x20] sm:$0xff]  ;;  %v1881_v18 = vld [vmem:[%s2002_s6 + $0x28] sm:$0xff]  ;;  %v1899_v19 = vld [vmem:[%s2002_s6 + $0x30] sm:$0xff] }
  0x17   : > { %v311_v34 = vrot.slane %v309_v29, 1  ;;  %v1195_v35 = vsel %vm1192_vm2, %v1193_v30, %v1194_v24  ;;  %v319_v48 = vrot.slane %v317_v43, 1  ;;  %v872_v49 = vor.u32 %v870_v44, %v868_v33 }
  0x18   : > { %1857 = vmatmul.msk.bf16.vlgmr.msra.gmra.mxu3 %vm446_vm1, %v1195_v35  ;;  %v864_v37 = vor.u32 %v863_v32, %v859_v25  ;;  %v876_v50 = vrot.slane %v874_v45, 1  ;;  %v1197_v51 = vsel %vm1192_vm2, %v1194_v24, %v1196_v46  ;;  %v321_v56 = vshrl.u32 %v1878_v40, 16  ;;  %v1882_v32 = vld [vmem:[%s2002_s6 + $0x30] sm:$0xff] }
  0x19   : > { %v312_v38 = vsel %vm300_vm3, %v307_v36, %v311_v34  ;;  %v315_v47 = vor.u32 %v313_v42, %v311_v34  ;;  %v325_v57 = vshll.u32 %v1879_v54, 16  ;;  %v878_v58 = vshrl.u32 %v1896_v41, 16 }
  0x1a   : > { %v869_v39 = vsel %vm300_vm3, %v864_v37, %v868_v33  ;;  %1726 = vmatmul.msk.bf16.vlgmr.msra.gmra.mxu0 %vm446_vm1, %v312_v38  ;;  %v877_v53 = vsel %vm300_vm3, %v872_v49, %v876_v50  ;;  %v882_v59 = vshll.u32 %v1897_v55, 16  ;;  %v1198_v60 = vrot.slane %v1897_v55, 1  ;;  %v1900_v33 = vld [vmem:[%s2002_s6 + $0x38] sm:$0xff] }
  0x1b   : > { %1834 = vmatmul.msk.bf16.vlgmr.msra.gmra.mxu2 %vm446_vm1, %v869_v39  ;;  %v320_v52 = vsel %vm300_vm3, %v315_v47, %v319_v48  ;;  %v323_v61 = vor.u32 %v321_v56, %v319_v48  ;;  %v327_v62 = vrot.slane %v325_v57, 1  ;;  %v880_v63 = vor.u32 %v878_v58, %v876_v50  ;;  %v1901_v47 = vld [vmem:[%s2002_s6 + $0x40] sm:$0xff] }
  0x1c   : > { %v884_v0 = vrot.slane %v882_v59, 1  ;;  %v1199_v1 = vsel %vm1192_vm2, %v1196_v46, %v1198_v60  ;;  %v329_v6 = vshrl.u32 %v1879_v54, 16  ;;  %v333_v7 = vshll.u32 %v1880_v4, 16  ;;  %v1883_v46 = vld [vmem:[%s2002_s6 + $0x38] sm:$0xff] }
  0x1d   : > { %v328_v2 = vsel %vm300_vm3, %v323_v61, %v327_v62  ;;  %v886_v8 = vshrl.u32 %v1897_v55, 16  ;;  %v890_v9 = vshll.u32 %v1898_v5, 16  ;;  %v1200_v10 = vrot.slane %v1898_v5, 1  ;;  %v1902_v61 = vld [vmem:[%s2002_s6 + $0x48] sm:$0xff] }
  0x1e   : > { %v885_v3 = vsel %vm300_vm3, %v880_v63, %v884_v0  ;;  %v331_v11 = vor.u32 %v329_v6, %v327_v62  ;;  %v335_v12 = vrot.slane %v333_v7, 1  ;;  %v337_v20 = vshrl.u32 %v1880_v4, 16 }
  0x1f   : > { %v888_v13 = vor.u32 %v886_v8, %v884_v0  ;;  %v892_v14 = vrot.slane %v890_v9, 1  ;;  %v1201_v15 = vsel %vm1192_vm2, %v1198_v60, %v1200_v10  ;;  %v894_v22 = vshrl.u32 %v1898_v5, 16  ;;  %v1884_v60 = vld [vmem:[%s2002_s6 + $0x40] sm:$0xff] }
  0x20   : > { %v336_v16 = vsel %vm300_vm3, %v331_v11, %v335_v12  ;;  %v898_v23 = vshll.u32 %v1899_v19, 16  ;;  %v1202_v24 = vrot.slane %v1899_v19, 1  ;;  %v339_v25 = vor.u32 %v337_v20, %v335_v12  ;;  %v1903_v11 = vld [vmem:[%s2002_s6 + $0x50] sm:$0xff] }
  0x21   : > { %v893_v17 = vsel %vm300_vm3, %v888_v13, %v892_v14  ;;  %v896_v27 = vor.u32 %v894_v22, %v892_v14  ;;  %v345_v34 = vshrl.u32 %v1881_v18, 16  ;;  %v349_v35 = vshll.u32 %v1882_v32, 16 }
  0x22   : > { %1748 = vmatmul.msk.bf16.gmra.mxu1 %vm446_vm1, %v1877_v21  ;;  %v341_v21 = vshll.u32 %v1881_v18, 16  ;;  %v900_v28 = vrot.slane %v898_v23, 1  ;;  %v1203_v29 = vsel %vm1192_vm2, %v1200_v10, %v1202_v24  ;;  %v902_v36 = vshrl.u32 %v1899_v19, 16  ;;  %v1885_v10 = vld [vmem:[%s2002_s6 + $0x48] sm:$0xff] }
  0x23   : > { %v906_v37 = vshll.u32 %v1900_v33, 16  ;;  %v1204_v38 = vrot.slane %v1900_v33, 1  ;;  %v353_v48 = vshrl.u32 %v1882_v32, 16  ;;  %v357_v49 = vshll.u32 %v1883_v46, 16 }
  0x24   : > { %v343_v26 = vrot.slane %v341_v21, 1  ;;  %v901_v31 = vsel %vm300_vm3, %v896_v27, %v900_v28  ;;  %v904_v41 = vor.u32 %v902_v36, %v900_v28  ;;  %v910_v50 = vshrl.u32 %v1900_v33, 16  ;;  %v2097_v33 = vld [vmem:[%s2319_s2] ss:$0 sm:$0xff] }
  0x25   : > { %v908_v42 = vrot.slane %v906_v37, 1  ;;  %v1205_v43 = vsel %vm1192_vm2, %v1202_v24, %v1204_v38  ;;  %v361_v62 = vshrl.u32 %v1883_v46, 16  ;;  %v365_v63 = vshll.u32 %v1884_v60, 16 }
  0x26   : > { %v344_v30 = vsel %vm300_vm3, %v339_v25, %v343_v26  ;;  %v347_v39 = vor.u32 %v345_v34, %v343_v26  ;;  %v918_v0 = vshrl.u32 %v1901_v47, 16  ;;  %v369_v12 = vshrl.u32 %v1884_v60, 16 }
  0x27   : > { %v909_v45 = vsel %vm300_vm3, %v904_v41, %v908_v42  ;;  %v912_v55 = vor.u32 %v910_v50, %v908_v42  ;;  %v373_v13 = vshll.u32 %v1885_v10, 16 }
  0x28   : > { %1858 = vmatmul.msk.bf16.gmra.mxu3 %vm446_vm1, %v1197_v51  ;;  %v914_v51 = vshll.u32 %v1901_v47, 16 }
  0x29   : > { %v375_v19 = vrot.slane %v373_v13, 1 }
  0x2a   : > { %1727 = vmatmul.msk.bf16.gmra.mxu0 %vm446_vm1, %v320_v52  ;;  %v1206_v52 = vrot.slane %v1901_v47, 1  ;;  %v916_v56 = vrot.slane %v914_v51, 1 }
  0x2b   : > { %1835 = vmatmul.msk.bf16.gmra.mxu2 %vm446_vm1, %v877_v53 }
  0x2c   : > { %v1207_v57 = vsel %vm1192_vm2, %v1204_v38, %v1206_v52  ;;  %v917_v59 = vsel %vm300_vm3, %v912_v55, %v916_v56  ;;  %v920_v5 = vor.u32 %v918_v0, %v916_v56  ;;  %v934_v38 = vshrl.u32 %v1903_v11, 16 }
  0x32   : > { %1749 = vmatmul.msk.bf16.gmra.mxu1 %vm446_vm1, %v1878_v40  ;;  %v351_v40 = vrot.slane %v349_v35, 1  ;;  %v377_v35 = vshrl.u32 %v1885_v10, 16 }
  0x34   : > { %v352_v44 = vsel %vm300_vm3, %v347_v39, %v351_v40  ;;  %v355_v53 = vor.u32 %v353_v48, %v351_v40 }
  0x38   : > { %1859 = vmatmul.msk.bf16.gmra.mxu3 %vm446_vm1, %v1199_v1  ;;  %v922_v1 = vshll.u32 %v1902_v61, 16 }
  0x3a   : > { %1728 = vmatmul.msk.bf16.gmra.mxu0 %vm446_vm1, %v328_v2  ;;  %v1208_v2 = vrot.slane %v1902_v61, 1  ;;  %v924_v6 = vrot.slane %v922_v1, 1 }
  0x3b   : > { %1836 = vmatmul.msk.bf16.gmra.mxu2 %vm446_vm1, %v885_v3 }
  0x3c   : > { %v1209_v7 = vsel %vm1192_vm2, %v1206_v52, %v1208_v2  ;;  %v925_v9 = vsel %vm300_vm3, %v920_v5, %v924_v6 }
  0x42   : > { %1750 = vmatmul.msk.bf16.gmra.mxu1 %vm446_vm1, %v1879_v54  ;;  %v359_v54 = vrot.slane %v357_v49, 1 }
  0x44   : > { %v360_v58 = vsel %vm300_vm3, %v355_v53, %v359_v54  ;;  %v363_v3 = vor.u32 %v361_v62, %v359_v54  ;;  %v1887_v62 = vld [vmem:[%s2002_s6 + $0x58] sm:$0xff] }
  0x48   : > { %1860 = vmatmul.msk.bf16.gmra.mxu3 %vm446_vm1, %v1201_v15  ;;  %v926_v15 = vshrl.u32 %v1902_v61, 16 }
  0x4a   : > { %1729 = vmatmul.msk.bf16.gmra.mxu0 %vm446_vm1, %v336_v16  ;;  %v930_v16 = vshll.u32 %v1903_v11, 16  ;;  %v928_v20 = vor.u32 %v926_v15, %v924_v6  ;;  %v389_v6 = vshll.u32 %v1887_v62, 16 }
  0x4b   : > { %1837 = vmatmul.msk.bf16.gmra.mxu2 %vm446_vm1, %v893_v17  ;;  %v1210_v17 = vrot.slane %v1903_v11, 1 }
  0x4c   : > { %v932_v21 = vrot.slane %v930_v16, 1  ;;  %v391_v15 = vrot.slane %v389_v6, 1 }
  0x4d   : > { %v1211_v22 = vsel %vm1192_vm2, %v1208_v2, %v1210_v17 }
  0x4e   : > { %v933_v25 = vsel %vm300_vm3, %v928_v20, %v932_v21 }
  0x52   : > { %1751 = vmatmul.msk.bf16.gmra.mxu1 %vm446_vm1, %v1880_v4  ;;  %v367_v4 = vrot.slane %v365_v63, 1  ;;  %v2120_v63 = vld [vmem:[%s2002_s6 + $0x60] sm:$0xff] }
  0x53   : > { %v1214_v11 = vrot.slane %v2120_v63, 1 }
  0x54   : > { %v368_v8 = vsel %vm300_vm3, %v363_v3, %v367_v4 }
  0x58   : > { %1861 = vmatmul.msk.bf16.gmra.mxu3 %vm446_vm1, %v1203_v29  ;;  %v1886_v29 = vld [vmem:[%s2002_s6 + $0x50] sm:$0xff] }
  0x59   : > { %v381_v36 = vshll.u32 %v1886_v29, 16  ;;  %v385_v5 = vshrl.u32 %v1886_v29, 16 }
  0x5a   : > { %1730 = vmatmul.msk.bf16.gmra.mxu0 %vm446_vm1, %v344_v30  ;;  %v2092_v30 = vld [vmem:[%s2002_s6 + $0x58] sm:$0xff] }
  0x5b   : > { %1838 = vmatmul.msk.bf16.gmra.mxu2 %vm446_vm1, %v901_v31  ;;  %v938_v39 = vshll.u32 %v2092_v30, 16  ;;  %v1212_v41 = vrot.slane %v2092_v30, 1 }
  0x5d   : > { %v940_v47 = vrot.slane %v938_v39, 1  ;;  %v1213_v50 = vsel %vm1192_vm2, %v1210_v17, %v1212_v41  ;;  %v1215_v20 = vsel %vm1192_vm2, %v1212_v41, %v1214_v11 }
  0x62   : > { %1752 = vmatmul.msk.bf16.gmra.mxu1 %vm446_vm1, %v1881_v18  ;;  %v371_v18 = vor.u32 %v369_v12, %v367_v4 }
  0x64   : > { %v376_v24 = vsel %vm300_vm3, %v371_v18, %v375_v19 }
  0x68   : > { %1862 = vmatmul.msk.bf16.gmra.mxu3 %vm446_vm1, %v1205_v43 }
  0x6a   : > { %1731 = vmatmul.msk.bf16.gmra.mxu0 %vm446_vm1, %v352_v44  ;;  %v379_v44 = vor.u32 %v377_v35, %v375_v19 }
  0x6b   : > { %1839 = vmatmul.msk.bf16.gmra.mxu2 %vm446_vm1, %v909_v45  ;;  %v383_v45 = vrot.slane %v381_v36, 1 }
  0x6d   : > { %v384_v55 = vsel %vm300_vm3, %v379_v44, %v383_v45 }
  0x72   : > { %1753 = vmatmul.msk.bf16.gmra.mxu1 %vm446_vm1, %v1882_v32 }
  0x78   : > { %1863 = vmatmul.msk.bf16.gmra.mxu3 %vm446_vm1, %v1207_v57 }
  0x7a   : > { %1732 = vmatmul.msk.bf16.gmra.mxu0 %vm446_vm1, %v360_v58 }
  0x7b   : > { %1840 = vmatmul.msk.bf16.gmra.mxu2 %vm446_vm1, %v917_v59 }
  0x82   : > { %1754 = vmatmul.msk.bf16.gmra.mxu1 %vm446_vm1, %v1883_v46  ;;  %v936_v46 = vor.u32 %v934_v38, %v932_v21 }
  0x84   : > { %v941_v56 = vsel %vm300_vm3, %v936_v46, %v940_v47 }
  0x88   : > { %1864 = vmatmul.msk.bf16.gmra.mxu3 %vm446_vm1, %v1209_v7 }
  0x8a   : > { %1733 = vmatmul.msk.bf16.gmra.mxu0 %vm446_vm1, %v368_v8  ;;  %v942_v8 = vshrl.u32 %v2092_v30, 16 }
  0x8b   : > { %1841 = vmatmul.msk.bf16.gmra.mxu2 %vm446_vm1, %v925_v9  ;;  %v946_v9 = vshll.u32 %v2120_v63, 16 }
  0x8c   : > { %v944_v16 = vor.u32 %v942_v8, %v940_v47 }
  0x8d   : > { %v948_v17 = vrot.slane %v946_v9, 1 }
  0x8f   : > { %v647_v14 = vpop.f32.mrf.mxu1 }
  0x92   : > { %1755 = vmatmul.msk.bf16.gmra.mxu1 %vm446_vm1, %v1884_v60 }
  0x97   : > { %v511_v23 = vpop.f32.mrf.mxu0  ;;  %v649_v26 = vpop.f32.mrf.mxu1 }
  0x98   : > { %1865 = vmatmul.msk.bf16.gmra.mxu3 %vm446_vm1, %v1211_v22  ;;  %v648_v27 = vadd.f32 %v647_v14, %v511_v23  ;;  %v387_v14 = vor.u32 %v385_v5, %v383_v45 }
  0x9a   : > { %1734 = vmatmul.msk.bf16.gmra.mxu0 %vm446_vm1, %v376_v24 }
  0x9b   : > { %1842 = vmatmul.msk.bf16.gmra.mxu2 %vm446_vm1, %v933_v25  ;;  %v1296_v28 = vpop.f32.mrf.mxu3  ;;  %v392_v25 = vsel %vm300_vm3, %v387_v14, %v391_v15 }
  0x9e   : > { %v1066_v31 = vpop.f32.mrf.mxu2 }
  0x9f   : > { %v1151_v32 = vadd.f32 %v1066_v31, %v648_v27  ;;  %v513_v34 = vpop.f32.mrf.mxu0  ;;  %v652_v37 = vpop.f32.mrf.mxu1 }
  0xa0   : > { %v650_v49 = vadd.f32 %v649_v26, %v513_v34  ;;  %v949_v26 = vsel %vm300_vm3, %v944_v16, %v948_v17  ;;  %v2140_v34 = vld [vmem:[%s2002_s6 + $0x68] sm:$0xff] }
  0xa1   : > { %v1381_v40 = vadd.f32 %v1296_v28, %v1151_v32  ;;  %v1888_v32 = vld [vmem:[%s2002_s6 + $0x60] sm:$0xff]  ;;  %v954_v44 = vshll.u32 %v2140_v34, 16  ;;  %v1216_v46 = vrot.slane %v2140_v34, 1 }
  0xa2   : > { %1756 = vmatmul.msk.bf16.gmra.mxu1 %vm446_vm1, %v1885_v10  ;;  %v397_v41 = vshll.u32 %v1888_v32, 16 }
  0xa3   : > { %v1419_v42 = vadd.f32 %v2097_v33, %v1381_v40  ;;  %v1298_v43 = vpop.f32.mrf.mxu3  ;;  %v393_v40 = vshrl.u32 %v1887_v62, 16 }
  0xa5   : > { %vm1453_vm5 = vcmp.ge.f32.partialorder %v1419_v42, 0.0  ;;  %v1487_v48 = vmul.f32 0.2, %v1419_v42 }
  0xa6   : > { %v1068_v51 = vpop.f32.mrf.mxu2 }
  0xa7   : > { %v1521_v52 = vsel %vm1453_vm5, %v1419_v42, %v1487_v48  ;;  %v1152_v53 = vadd.f32 %v1068_v51, %v650_v49  ;;  %v516_v54 = vpop.f32.mrf.mxu0  ;;  %v654_v57 = vpop.f32.mrf.mxu1  ;;  %v395_v49 = vor.u32 %v393_v40, %v391_v15 }
  0xa8   : > { %1556 = vst.msk [vmem:[%s2107_s14] sm:$0xff] %vm1555_vm4, %v1521_v52  ;;  %1866 = vmatmul.msk.bf16.gmra.mxu3 %vm446_vm1, %v1213_v50  ;;  %v653_v60 = vadd.f32 %v652_v37, %v516_v54  ;;  %v399_v50 = vrot.slane %v397_v41, 1  ;;  %v956_v52 = vrot.slane %v954_v44, 1 }
  0xa9   : > { %v1382_v58 = vadd.f32 %v1298_v43, %v1152_v53  ;;  %v950_v43 = vshrl.u32 %v2120_v63, 16 }
  0xaa   : > { %1735 = vmatmul.msk.bf16.gmra.mxu0 %vm446_vm1, %v384_v55  ;;  %v1217_v55 = vsel %vm1192_vm2, %v1214_v11, %v1216_v46 }
  0xab   : > { %v1420_v59 = vadd.f32 %v2097_v33, %v1382_v58  ;;  %1843 = vmatmul.msk.bf16.gmra.mxu2 %vm446_vm1, %v941_v56  ;;  %v1301_v61 = vpop.f32.mrf.mxu3  ;;  %v952_v51 = vor.u32 %v950_v43, %v948_v17 }
  0xad   : > { %vm1454_vm6 = vcmp.ge.f32.partialorder %v1420_v59, 0.0  ;;  %v1488_v0 = vmul.f32 0.2, %v1420_v59 }
  0xae   : > { %v1071_v1 = vpop.f32.mrf.mxu2 }
  0xaf   : > { %v1522_v2 = vsel %vm1454_vm6, %v1420_v59, %v1488_v0  ;;  %v1153_v3 = vadd.f32 %v1071_v1, %v653_v60  ;;  %v518_v4 = vpop.f32.mrf.mxu0  ;;  %v657_v7 = vpop.f32.mrf.mxu1  ;;  %v400_v60 = vsel %vm300_vm3, %v395_v49, %v399_v50 }
  0xb0   : > { %1557 = vst.msk [vmem:[%s2107_s14 + $0x8] sm:$0xff] %vm1555_vm4, %v1522_v2  ;;  %v655_v19 = vadd.f32 %v654_v57, %v518_v4  ;;  %v2160_v4 = vld [vmem:[%s2002_s6 + $0x70] sm:$0xff] }
  0xb1   : > { %v1383_v10 = vadd.f32 %v1301_v61, %v1153_v3  ;;  %v957_v61 = vsel %vm300_vm3, %v952_v51, %v956_v52  ;;  %v1889_v3 = vld [vmem:[%s2002_s6 + $0x68] sm:$0xff]  ;;  %v962_v14 = vshll.u32 %v2160_v4, 16  ;;  %v1218_v16 = vrot.slane %v2160_v4, 1 }
  0xb2   : > { %1757 = vmatmul.msk.bf16.gmra.mxu1 %vm446_vm1, %v1886_v29  ;;  %v405_v11 = vshll.u32 %v1889_v3, 16 }
  0xb3   : > { %v1421_v12 = vadd.f32 %v2097_v33, %v1383_v10  ;;  %v1303_v13 = vpop.f32.mrf.mxu3  ;;  %v401_v10 = vshrl.u32 %v1888_v32, 16 }
  0xb5   : > { %vm1455_vm7 = vcmp.ge.f32.partialorder %v1421_v12, 0.0  ;;  %v1489_v18 = vmul.f32 0.2, %v1421_v12 }
  0xb6   : > { %v1073_v21 = vpop.f32.mrf.mxu2 }
  0xb7   : > { %v1523_v22 = vsel %vm1455_vm7, %v1421_v12, %v1489_v18  ;;  %v1154_v23 = vadd.f32 %v1073_v21, %v655_v19  ;;  %v521_v24 = vpop.f32.mrf.mxu0  ;;  %v659_v27 = vpop.f32.mrf.mxu1  ;;  %v403_v19 = vor.u32 %v401_v10, %v399_v50 }
  0xb8   : > { %1558 = vst.msk [vmem:[%s2107_s14 + $0x10] sm:$0xff] %vm1555_vm4, %v1523_v22  ;;  %1867 = vmatmul.msk.bf16.gmra.mxu3 %vm446_vm1, %v1215_v20  ;;  %v658_v30 = vadd.f32 %v657_v7, %v521_v24  ;;  %v407_v20 = vrot.slane %v405_v11, 1  ;;  %v964_v22 = vrot.slane %v962_v14, 1 }
  0xb9   : > { %v1384_v28 = vadd.f32 %v1303_v13, %v1154_v23  ;;  %v958_v13 = vshrl.u32 %v2140_v34, 16 }
  0xba   : > { %1736 = vmatmul.msk.bf16.gmra.mxu0 %vm446_vm1, %v392_v25  ;;  %v1219_v25 = vsel %vm1192_vm2, %v1216_v46, %v1218_v16 }
  0xbb   : > { %v1422_v29 = vadd.f32 %v2097_v33, %v1384_v28  ;;  %1844 = vmatmul.msk.bf16.gmra.mxu2 %vm446_vm1, %v949_v26  ;;  %v1306_v31 = vpop.f32.mrf.mxu3  ;;  %v960_v21 = vor.u32 %v958_v13, %v956_v52 }
  0xbd   : > { %vm1456_vm8 = vcmp.ge.f32.partialorder %v1422_v29, 0.0  ;;  %v1490_v35 = vmul.f32 0.2, %v1422_v29 }
  0xbe   : > { %v1076_v36 = vpop.f32.mrf.mxu2 }
  0xbf   : > { %v1524_v37 = vsel %vm1456_vm8, %v1422_v29, %v1490_v35  ;;  %v1155_v38 = vadd.f32 %v1076_v36, %v658_v30  ;;  %v523_v39 = vpop.f32.mrf.mxu0  ;;  %v662_v42 = vpop.f32.mrf.mxu1  ;;  %v408_v30 = vsel %vm300_vm3, %v403_v19, %v407_v20 }
  0xc0   : > { %1559 = vst.msk [vmem:[%s2107_s14 + $0x18] sm:$0xff] %vm1555_vm4, %v1524_v37  ;;  %v660_v54 = vadd.f32 %v659_v27, %v523_v39  ;;  %v2180_v39 = vld [vmem:[%s2002_s6 + $0x78] sm:$0xff] }
  0xc1   : > { %v1385_v45 = vadd.f32 %v1306_v31, %v1155_v38  ;;  %v965_v31 = vsel %vm300_vm3, %v960_v21, %v964_v22  ;;  %v1890_v38 = vld [vmem:[%s2002_s6 + $0x70] sm:$0xff]  ;;  %v970_v49 = vshll.u32 %v2180_v39, 16  ;;  %v1220_v51 = vrot.slane %v2180_v39, 1 }
  0xc2   : > { %1758 = vmatmul.msk.bf16.gmra.mxu1 %vm446_vm1, %v1887_v62  ;;  %v413_v46 = vshll.u32 %v1890_v38, 16 }
  0xc3   : > { %v1423_v47 = vadd.f32 %v2097_v33, %v1385_v45  ;;  %v1308_v48 = vpop.f32.mrf.mxu3  ;;  %v409_v45 = vshrl.u32 %v1889_v3, 16 }
  0xc5   : > { %vm1457_vm9 = vcmp.ge.f32.partialorder %v1423_v47, 0.0  ;;  %v1491_v53 = vmul.f32 0.2, %v1423_v47 }
  0xc6   : > { %v1078_v56 = vpop.f32.mrf.mxu2 }
  0xc7   : > { %v1525_v57 = vsel %vm1457_vm9, %v1423_v47, %v1491_v53  ;;  %v1156_v58 = vadd.f32 %v1078_v56, %v660_v54  ;;  %v526_v59 = vpop.f32.mrf.mxu0  ;;  %v664_v62 = vpop.f32.mrf.mxu1  ;;  %v411_v54 = vor.u32 %v409_v45, %v407_v20 }
  0xc8   : > { %1560 = vst.msk [vmem:[%s2107_s14 + $0x20] sm:$0xff] %vm1555_vm4, %v1525_v57  ;;  %1868 = vmatmul.msk.bf16.gmra.mxu3 %vm446_vm1, %v1217_v55  ;;  %v663_v1 = vadd.f32 %v662_v42, %v526_v59  ;;  %v415_v55 = vrot.slane %v413_v46, 1  ;;  %v972_v57 = vrot.slane %v970_v49, 1 }
  0xc9   : > { %v1386_v63 = vadd.f32 %v1308_v48, %v1156_v58  ;;  %v966_v48 = vshrl.u32 %v2160_v4, 16 }
  0xca   : > { %1737 = vmatmul.msk.bf16.gmra.mxu0 %vm446_vm1, %v400_v60  ;;  %v1221_v60 = vsel %vm1192_vm2, %v1218_v16, %v1220_v51 }
  0xcb   : > { %v1424_v0 = vadd.f32 %v2097_v33, %v1386_v63  ;;  %1845 = vmatmul.msk.bf16.gmra.mxu2 %vm446_vm1, %v957_v61  ;;  %v1311_v2 = vpop.f32.mrf.mxu3  ;;  %v968_v56 = vor.u32 %v966_v48, %v964_v22 }
  0xcd   : > { %vm1458_vm10 = vcmp.ge.f32.partialorder %v1424_v0, 0.0  ;;  %v1492_v5 = vmul.f32 0.2, %v1424_v0 }
  0xce   : > { %v1081_v6 = vpop.f32.mrf.mxu2 }
  0xcf   : > { %v1526_v7 = vsel %vm1458_vm10, %v1424_v0, %v1492_v5  ;;  %v1157_v8 = vadd.f32 %v1081_v6, %v663_v1  ;;  %v528_v9 = vpop.f32.mrf.mxu0  ;;  %v667_v12 = vpop.f32.mrf.mxu1  ;;  %v416_v1 = vsel %vm300_vm3, %v411_v54, %v415_v55 }
  0xd0   : > { %1561 = vst.msk [vmem:[%s2107_s14 + $0x28] sm:$0xff] %vm1555_vm4, %v1526_v7  ;;  %v665_v24 = vadd.f32 %v664_v62, %v528_v9  ;;  %v2200_v9 = vld [vmem:[%s2002_s6 + $0x80] sm:$0xff] }
  0xd1   : > { %v1387_v15 = vadd.f32 %v1311_v2, %v1157_v8  ;;  %v973_v2 = vsel %vm300_vm3, %v968_v56, %v972_v57  ;;  %v1891_v8 = vld [vmem:[%s2002_s6 + $0x78] sm:$0xff]  ;;  %v978_v19 = vshll.u32 %v2200_v9, 16  ;;  %v1222_v21 = vrot.slane %v2200_v9, 1 }
  0xd2   : > { %1759 = vmatmul.msk.bf16.gmra.mxu1 %vm446_vm1, %v1888_v32  ;;  %v421_v16 = vshll.u32 %v1891_v8, 16 }
  0xd3   : > { %v1425_v17 = vadd.f32 %v2097_v33, %v1387_v15  ;;  %v1313_v18 = vpop.f32.mrf.mxu3  ;;  %v417_v15 = vshrl.u32 %v1890_v38, 16 }
  0xd5   : > { %vm1459_vm11 = vcmp.ge.f32.partialorder %v1425_v17, 0.0  ;;  %v1493_v23 = vmul.f32 0.2, %v1425_v17 }
  0xd6   : > { %v1083_v26 = vpop.f32.mrf.mxu2 }
  0xd7   : > { %v1527_v27 = vsel %vm1459_vm11, %v1425_v17, %v1493_v23  ;;  %v1158_v28 = vadd.f32 %v1083_v26, %v665_v24  ;;  %v531_v29 = vpop.f32.mrf.mxu0  ;;  %v669_v32 = vpop.f32.mrf.mxu1  ;;  %v419_v24 = vor.u32 %v417_v15, %v415_v55 }
  0xd8   : > { %1562 = vst.msk [vmem:[%s2107_s14 + $0x30] sm:$0xff] %vm1555_vm4, %v1527_v27  ;;  %1869 = vmatmul.msk.bf16.gmra.mxu3 %vm446_vm1, %v1219_v25  ;;  %v668_v36 = vadd.f32 %v667_v12, %v531_v29  ;;  %v423_v25 = vrot.slane %v421_v16, 1  ;;  %v980_v27 = vrot.slane %v978_v19, 1 }
  0xd9   : > { %v1388_v34 = vadd.f32 %v1313_v18, %v1158_v28  ;;  %v974_v18 = vshrl.u32 %v2180_v39, 16 }
  0xda   : > { %1738 = vmatmul.msk.bf16.gmra.mxu0 %vm446_vm1, %v408_v30  ;;  %v1223_v30 = vsel %vm1192_vm2, %v1220_v51, %v1222_v21 }
  0xdb   : > { %v1426_v35 = vadd.f32 %v2097_v33, %v1388_v34  ;;  %1846 = vmatmul.msk.bf16.gmra.mxu2 %vm446_vm1, %v965_v31  ;;  %v1316_v37 = vpop.f32.mrf.mxu3  ;;  %v976_v26 = vor.u32 %v974_v18, %v972_v57 }
  0xdd   : > { %vm1460_vm12 = vcmp.ge.f32.partialorder %v1426_v35, 0.0  ;;  %v1494_v40 = vmul.f32 0.2, %v1426_v35 }
  0xde   : > { %v1086_v41 = vpop.f32.mrf.mxu2 }
  0xdf   : > { %v1528_v42 = vsel %vm1460_vm12, %v1426_v35, %v1494_v40  ;;  %v1159_v43 = vadd.f32 %v1086_v41, %v668_v36  ;;  %v533_v44 = vpop.f32.mrf.mxu0  ;;  %v672_v47 = vpop.f32.mrf.mxu1  ;;  %v424_v36 = vsel %vm300_vm3, %v419_v24, %v423_v25 }
  0xe0   : > { %1563 = vst.msk [vmem:[%s2107_s14 + $0x38] sm:$0xff] %vm1555_vm4, %v1528_v42  ;;  %v670_v59 = vadd.f32 %v669_v32, %v533_v44  ;;  %v2222_v44 = vld [vmem:[%s2002_s6 + $0x88] sm:$0xff] }
  0xe1   : > { %v1389_v50 = vadd.f32 %v1316_v37, %v1159_v43  ;;  %v981_v37 = vsel %vm300_vm3, %v976_v26, %v980_v27  ;;  %v2219_v43 = vld [vmem:[%s2002_s6 + $0x80] sm:$0xff]  ;;  %v986_v54 = vshll.u32 %v2222_v44, 16  ;;  %v1224_v56 = vrot.slane %v2222_v44, 1 }
  0xe2   : > { %1760 = vmatmul.msk.bf16.gmra.mxu1 %vm446_vm1, %v1889_v3  ;;  %v429_v51 = vshll.u32 %v2219_v43, 16  ;;  %v433_v24 = vshrl.u32 %v2219_v43, 16 }
  0xe3   : > { %v1427_v52 = vadd.f32 %v2097_v33, %v1389_v50  ;;  %v1318_v53 = vpop.f32.mrf.mxu3  ;;  %v425_v50 = vshrl.u32 %v1891_v8, 16 }
  0xe5   : > { %vm1461_vm13 = vcmp.ge.f32.partialorder %v1427_v52, 0.0  ;;  %v1495_v58 = vmul.f32 0.2, %v1427_v52 }
  0xe6   : > { %v1088_v61 = vpop.f32.mrf.mxu2 }
  0xe7   : > { %v1529_v62 = vsel %vm1461_vm13, %v1427_v52, %v1495_v58  ;;  %v1160_v63 = vadd.f32 %v1088_v61, %v670_v59  ;;  %v536_v0 = vpop.f32.mrf.mxu0  ;;  %v674_v3 = vpop.f32.mrf.mxu1  ;;  %v427_v59 = vor.u32 %v425_v50, %v423_v25 }
  0xe8   : > { %1564 = vst.msk [vmem:[%s2107_s14 + $0x40] sm:$0xff] %vm1555_vm4, %v1529_v62  ;;  %1870 = vmatmul.msk.bf16.gmra.mxu3 %vm446_vm1, %v1221_v60  ;;  %v673_v6 = vadd.f32 %v672_v47, %v536_v0  ;;  %v431_v60 = vrot.slane %v429_v51, 1  ;;  %v988_v62 = vrot.slane %v986_v54, 1 }
  0xe9   : > { %v1390_v4 = vadd.f32 %v1318_v53, %v1160_v63  ;;  %v982_v53 = vshrl.u32 %v2200_v9, 16  ;;  %v208_v63 = vld [vmem:[%s2002_s6 + $0x88] sm:$0x1] }
  0xea   : > { %1739 = vmatmul.msk.bf16.gmra.mxu0 %vm446_vm1, %v416_v1  ;;  %v432_v9 = vsel %vm300_vm3, %v427_v59, %v431_v60 }
  0xeb   : > { %v1428_v5 = vadd.f32 %v2097_v33, %v1390_v4  ;;  %1847 = vmatmul.msk.bf16.gmra.mxu2 %vm446_vm1, %v973_v2  ;;  %v1321_v7 = vpop.f32.mrf.mxu3  ;;  %v984_v61 = vor.u32 %v982_v53, %v980_v27  ;;  %v1225_v2 = vsel %vm1192_vm2, %v1222_v21, %v1224_v56  ;;  %v990_v27 = vshrl.u32 %v2222_v44, 16 }
  0xed   : > { %vm1462_vm14 = vcmp.ge.f32.partialorder %v1428_v5, 0.0  ;;  %v1496_v10 = vmul.f32 0.2, %v1428_v5 }
  0xee   : > { %v1091_v11 = vpop.f32.mrf.mxu2 }
  0xef   : > { %v1530_v12 = vsel %vm1462_vm14, %v1428_v5, %v1496_v10  ;;  %v1161_v13 = vadd.f32 %v1091_v11, %v673_v6  ;;  %v538_v14 = vpop.f32.mrf.mxu0  ;;  %v677_v17 = vpop.f32.mrf.mxu1  ;;  %v281_v10 = vunpack.c.l.b16 %v208_v63 }
  0xf0   : > { %1565 = vst.msk [vmem:[%s2107_s14 + $0x48] sm:$0xff] %vm1555_vm4, %v1530_v12  ;;  %v675_v29 = vadd.f32 %v674_v3, %v538_v14  ;;  %v766_v3 = vld [vmem:[%s2002_s6 + $0x90] sm:$0x1] }
  0xf1   : > { %v1391_v20 = vadd.f32 %v1321_v7, %v1161_v13  ;;  %v839_v12 = vunpack.c.l.b16 %v766_v3 }
  0xf2   : > { %1761 = vmatmul.msk.bf16.gmra.mxu1 %vm446_vm1, %v1890_v38 }
  0xf3   : > { %v1429_v22 = vadd.f32 %v2097_v33, %v1391_v20  ;;  %v1323_v23 = vpop.f32.mrf.mxu3  ;;  %v857_v18 = vpack.c.b16 %v839_v12, %v839_v12 }
  0xf5   : > { %vm1463_vm15 = vcmp.ge.f32.partialorder %v1429_v22, 0.0  ;;  %v1497_v28 = vmul.f32 0.2, %v1429_v22 }
  0xf6   : > { %v1093_v31 = vpop.f32.mrf.mxu2 }
  0xf7   : > { %v1531_v32 = vsel %vm1463_vm15, %v1429_v22, %v1497_v28  ;;  %v1162_v34 = vadd.f32 %v1093_v31, %v675_v29  ;;  %v541_v35 = vpop.f32.mrf.mxu0  ;;  %v679_v38 = vpop.f32.mrf.mxu1  ;;  %v994_v28 = vshll.u32 %v857_v18, 16 }
  0xf8   : > { %1566 = vst.msk [vmem:[%s2107_s14 + $0x50] sm:$0xff] %vm1555_vm4, %v1531_v32  ;;  %1871 = vmatmul.msk.bf16.gmra.mxu3 %vm446_vm1, %v1223_v30  ;;  %v678_v41 = vadd.f32 %v677_v17, %v541_v35  ;;  %v299_v17 = vpack.c.b16 %v281_v10, %v281_v10  ;;  %v1226_v30 = vrot.slane %v857_v18, 1 }
  0xf9   : > { %v1392_v39 = vadd.f32 %v1323_v23, %v1162_v34  ;;  %v435_v34 = vor.u32 %v433_v24, %v431_v60 }
  0xfa   : > { %1740 = vmatmul.msk.bf16.gmra.mxu0 %vm446_vm1, %v424_v36  ;;  %v437_v25 = vshll.u32 %v299_v17, 16  ;;  %v992_v36 = vor.u32 %v990_v27, %v988_v62 }
  0xfb   : > { %v1430_v40 = vadd.f32 %v2097_v33, %v1392_v39  ;;  %1848 = vmatmul.msk.bf16.gmra.mxu2 %vm446_vm1, %v981_v37  ;;  %v1326_v42 = vpop.f32.mrf.mxu3  ;;  %v996_v37 = vrot.slane %v994_v28, 1 }
  0xfc   : > { %v439_v35 = vrot.slane %v437_v25, 1 }
  0xfd   : > { %vm1464_vm0 = vcmp.ge.f32.partialorder %v1430_v40, 0.0  ;;  %v1498_v45 = vmul.f32 0.2, %v1430_v40 }
  0xfe   : > { %v1096_v46 = vpop.f32.mrf.mxu2 }
  0xff   : > { %v1532_v47 = vsel %vm1464_vm0, %v1430_v40, %v1498_v45  ;;  %v1163_v48 = vadd.f32 %v1096_v46, %v678_v41  ;;  %v543_v49 = vpop.f32.mrf.mxu0  ;;  %v682_v52 = vpop.f32.mrf.mxu1  ;;  %v1227_v40 = vsel %vm1192_vm2, %v1224_v56, %v1226_v30  ;;  %v440_v46 = vsel %vm300_vm3, %v435_v34, %v439_v35 }
 0x100   : > { %1567 = vst.msk [vmem:[%s2107_s14 + $0x58] sm:$0xff] %vm1555_vm4, %v1532_v47  ;;  %v680_v1 = vadd.f32 %v679_v38, %v543_v49 }
 0x101   : > { %v1393_v55 = vadd.f32 %v1326_v42, %v1163_v48 }
 0x102   : > { %1762 = vmatmul.msk.bf16.gmra.mxu1 %vm446_vm1, %v1891_v8  ;;  %v989_v8 = vsel %vm300_vm3, %v984_v61, %v988_v62 }
 0x103   : > { %v1431_v57 = vadd.f32 %v2097_v33, %v1393_v55  ;;  %v1328_v58 = vpop.f32.mrf.mxu3 }
 0x105   : > { %vm1465_vm5 = vcmp.ge.f32.partialorder %v1431_v57, 0.0  ;;  %v1499_v0 = vmul.f32 0.2, %v1431_v57 }
 0x106   : > { %v1098_v4 = vpop.f32.mrf.mxu2 }
 0x107   : > { %v1533_v5 = vsel %vm1465_vm5, %v1431_v57, %v1499_v0  ;;  %v1164_v6 = vadd.f32 %v1098_v4, %v680_v1  ;;  %v546_v7 = vpop.f32.mrf.mxu0  ;;  %v684_v11 = vpop.f32.mrf.mxu1 }
 0x108   : > { %1568 = vst.msk [vmem:[%s2107_s14 + $0x60] sm:$0xff] %vm1555_vm4, %v1533_v5  ;;  %1872 = vmatmul.msk.bf16.gmra.mxu3 %vm446_vm1, %v1225_v2  ;;  %v683_v15 = vadd.f32 %v682_v52, %v546_v7 }
 0x109   : > { %v1394_v13 = vadd.f32 %v1328_v58, %v1164_v6 }
 0x10a   : > { %1741 = vmatmul.msk.bf16.gmra.mxu0 %vm446_vm1, %v432_v9 }
 0x10b   : > { %v1432_v14 = vadd.f32 %v2097_v33, %v1394_v13  ;;  %1849 = vmatmul.msk.bf16.gmra.mxu2 %vm446_vm1, %v989_v8  ;;  %v1331_v16 = vpop.f32.mrf.mxu3 }
 0x10d   : > { %vm1466_vm6 = vcmp.ge.f32.partialorder %v1432_v14, 0.0  ;;  %v1500_v19 = vmul.f32 0.2, %v1432_v14 }
 0x10e   : > { %v1101_v20 = vpop.f32.mrf.mxu2 }
 0x10f   : > { %v1534_v21 = vsel %vm1466_vm6, %v1432_v14, %v1500_v19  ;;  %v1165_v22 = vadd.f32 %v1101_v20, %v683_v15  ;;  %v548_v23 = vpop.f32.mrf.mxu0  ;;  %v687_v26 = vpop.f32.mrf.mxu1 }
 0x110   : > { %1569 = vst.msk [vmem:[%s2107_s14 + $0x68] sm:$0xff] %vm1555_vm4, %v1534_v21  ;;  %v685_v39 = vadd.f32 %v684_v11, %v548_v23 }
 0x111   : > { %v1395_v29 = vadd.f32 %v1331_v16, %v1165_v22 }
 0x112   : > { %1763 = vmatmul.msk.bf16.gmra.mxu1 %vm446_vm1, %v2219_v43  ;;  %v997_v43 = vsel %vm300_vm3, %v992_v36, %v996_v37 }
 0x113   : > { %v1433_v31 = vadd.f32 %v2097_v33, %v1395_v29  ;;  %v1333_v32 = vpop.f32.mrf.mxu3 }
 0x115   : > { %vm1467_vm7 = vcmp.ge.f32.partialorder %v1433_v31, 0.0  ;;  %v1501_v38 = vmul.f32 0.2, %v1433_v31 }
 0x116   : > { %v1103_v41 = vpop.f32.mrf.mxu2 }
 0x117   : > { %v1535_v42 = vsel %vm1467_vm7, %v1433_v31, %v1501_v38  ;;  %v1166_v44 = vadd.f32 %v1103_v41, %v685_v39  ;;  %v551_v45 = vpop.f32.mrf.mxu0  ;;  %v689_v47 = vpop.f32.mrf.mxu1 }
 0x118   : > { %1570 = vst.msk [vmem:[%s2107_s14 + $0x70] sm:$0xff] %vm1555_vm4, %v1535_v42  ;;  %1873 = vmatmul.msk.bf16.gmra.mxu3 %vm446_vm1, %v1227_v40  ;;  %v688_v50 = vadd.f32 %v687_v26, %v551_v45 }
 0x119   : > { %v1396_v48 = vadd.f32 %v1333_v32, %v1166_v44 }
 0x11a   : > { %1742 = vmatmul.msk.bf16.gmra.mxu0 %vm446_vm1, %v440_v46 }
 0x11b   : > { %v1434_v49 = vadd.f32 %v2097_v33, %v1396_v48  ;;  %1850 = vmatmul.msk.bf16.gmra.mxu2 %vm446_vm1, %v997_v43  ;;  %v1336_v51 = vpop.f32.mrf.mxu3 }
 0x11d   : > { %vm1468_vm2 = vcmp.ge.f32.partialorder %v1434_v49, 0.0  ;;  %v1502_v52 = vmul.f32 0.2, %v1434_v49 }
 0x11e   : > { %v1106_v53 = vpop.f32.mrf.mxu2 }
 0x11f   : > { %v1536_v54 = vsel %vm1468_vm2, %v1434_v49, %v1502_v52  ;;  %v1167_v55 = vadd.f32 %v1106_v53, %v688_v50  ;;  %v553_v56 = vpop.f32.mrf.mxu0  ;;  %v692_v57 = vpop.f32.mrf.mxu1 }
 0x120   : > { %1571 = vst.msk [vmem:[%s2107_s14 + $0x78] sm:$0xff] %vm1555_vm4, %v1536_v54  ;;  %v690_v62 = vadd.f32 %v689_v47, %v553_v56 }
 0x121   : > { %v1397_v58 = vadd.f32 %v1336_v51, %v1167_v55 }
 0x123   : > { %v1435_v59 = vadd.f32 %v2097_v33, %v1397_v58  ;;  %v1338_v60 = vpop.f32.mrf.mxu3 }
 0x125   : > { %vm1469_vm3 = vcmp.ge.f32.partialorder %v1435_v59, 0.0  ;;  %v1503_v61 = vmul.f32 0.2, %v1435_v59 }
 0x126   : > { %v1108_v63 = vpop.f32.mrf.mxu2 }
 0x127   : > { %v1537_v0 = vsel %vm1469_vm3, %v1435_v59, %v1503_v61  ;;  %v1168_v1 = vadd.f32 %v1108_v63, %v690_v62  ;;  %v556_v2 = vpop.f32.mrf.mxu0  ;;  %v694_v3 = vpop.f32.mrf.mxu1 }
 0x128   : > { %1572 = vst.msk [vmem:[%s2107_s14 + $0x80] sm:$0xff] %vm1555_vm4, %v1537_v0  ;;  %v693_v6 = vadd.f32 %v692_v57, %v556_v2 }
 0x129   : > { %v1398_v4 = vadd.f32 %v1338_v60, %v1168_v1 }
 0x12b   : > { %v1436_v5 = vadd.f32 %v2097_v33, %v1398_v4  ;;  %v1341_v7 = vpop.f32.mrf.mxu3 }
 0x12d   : > { %vm1470_vm1 = vcmp.ge.f32.partialorder %v1436_v5, 0.0  ;;  %v1504_v9 = vmul.f32 0.2, %v1436_v5 }
 0x12e   : > { %v1111_v10 = vpop.f32.mrf.mxu2 }
 0x12f   : > { %v1538_v8 = vsel %vm1470_vm1, %v1436_v5, %v1504_v9  ;;  %v1169_v11 = vadd.f32 %v1111_v10, %v693_v6  ;;  %v558_v12 = vpop.f32.mrf.mxu0  ;;  %v697_v13 = vpop.f32.mrf.mxu1 }
 0x130   : > { %1573 = vst.msk [vmem:[%s2107_s14 + $0x88] sm:$0xff] %vm1555_vm4, %v1538_v8  ;;  %v695_v18 = vadd.f32 %v694_v3, %v558_v12 }
 0x131   : > { %v1399_v14 = vadd.f32 %v1341_v7, %v1169_v11 }
 0x133   : > { %v1437_v15 = vadd.f32 %v2097_v33, %v1399_v14  ;;  %v1343_v16 = vpop.f32.mrf.mxu3 }
 0x135   : > { %vm1471_vm8 = vcmp.ge.f32.partialorder %v1437_v15, 0.0  ;;  %v1505_v17 = vmul.f32 0.2, %v1437_v15 }
 0x136   : > { %v1113_v19 = vpop.f32.mrf.mxu2 }
 0x137   : > { %v1539_v20 = vsel %vm1471_vm8, %v1437_v15, %v1505_v17  ;;  %v1170_v21 = vadd.f32 %v1113_v19, %v695_v18  ;;  %v561_v22 = vpop.f32.mrf.mxu0  ;;  %v699_v23 = vpop.f32.mrf.mxu1 }
 0x138   : > { %1574 = vst.msk [vmem:[%s2107_s14 + $0x90] sm:$0xff] %vm1555_vm4, %v1539_v20  ;;  %v698_v26 = vadd.f32 %v697_v13, %v561_v22 }
 0x139   : > { %v1400_v24 = vadd.f32 %v1343_v16, %v1170_v21 }
 0x13b   : > { %v1438_v25 = vadd.f32 %v2097_v33, %v1400_v24  ;;  %v1346_v27 = vpop.f32.mrf.mxu3 }
 0x13d   : > { %vm1472_vm9 = vcmp.ge.f32.partialorder %v1438_v25, 0.0  ;;  %v1506_v28 = vmul.f32 0.2, %v1438_v25 }
 0x13e   : > { %v1116_v29 = vpop.f32.mrf.mxu2 }
 0x13f   : > { %v1540_v30 = vsel %vm1472_vm9, %v1438_v25, %v1506_v28  ;;  %v1171_v31 = vadd.f32 %v1116_v29, %v698_v26  ;;  %v563_v32 = vpop.f32.mrf.mxu0  ;;  %v702_v34 = vpop.f32.mrf.mxu1 }
 0x140   : > { %1575 = vst.msk [vmem:[%s2107_s14 + $0x98] sm:$0xff] %vm1555_vm4, %v1540_v30  ;;  %v700_v39 = vadd.f32 %v699_v23, %v563_v32 }
 0x141   : > { %v1401_v35 = vadd.f32 %v1346_v27, %v1171_v31 }
 0x143   : > { %v1439_v36 = vadd.f32 %v2097_v33, %v1401_v35  ;;  %v1348_v37 = vpop.f32.mrf.mxu3 }
 0x145   : > { %vm1473_vm10 = vcmp.ge.f32.partialorder %v1439_v36, 0.0  ;;  %v1507_v38 = vmul.f32 0.2, %v1439_v36 }
 0x146   : > { %v1118_v40 = vpop.f32.mrf.mxu2 }
 0x147   : > { %v1541_v41 = vsel %vm1473_vm10, %v1439_v36, %v1507_v38  ;;  %v1172_v42 = vadd.f32 %v1118_v40, %v700_v39  ;;  %v566_v44 = vpop.f32.mrf.mxu0  ;;  %v704_v45 = vpop.f32.mrf.mxu1 }
 0x148   : > { %1576 = vst.msk [vmem:[%s2107_s14 + $0xa0] sm:$0xff] %vm1555_vm4, %v1541_v41  ;;  %v703_v47 = vadd.f32 %v702_v34, %v566_v44 }
 0x149   : > { %v1402_v46 = vadd.f32 %v1348_v37, %v1172_v42 }
 0x14b   : > { %v1440_v43 = vadd.f32 %v2097_v33, %v1402_v46  ;;  %v1351_v48 = vpop.f32.mrf.mxu3 }
 0x14d   : > { %vm1474_vm11 = vcmp.ge.f32.partialorder %v1440_v43, 0.0  ;;  %v1508_v49 = vmul.f32 0.2, %v1440_v43 }
 0x14e   : > { %v1121_v50 = vpop.f32.mrf.mxu2 }
 0x14f   : > { %v1542_v51 = vsel %vm1474_vm11, %v1440_v43, %v1508_v49  ;;  %v1173_v52 = vadd.f32 %v1121_v50, %v703_v47  ;;  %v568_v53 = vpop.f32.mrf.mxu0  ;;  %v707_v54 = vpop.f32.mrf.mxu1 }
 0x150   : > { %1577 = vst.msk [vmem:[%s2107_s14 + $0xa8] sm:$0xff] %vm1555_vm4, %v1542_v51  ;;  %v705_v59 = vadd.f32 %v704_v45, %v568_v53 }
 0x151   : > { %v1403_v55 = vadd.f32 %v1351_v48, %v1173_v52 }
 0x153   : > { %v1441_v56 = vadd.f32 %v2097_v33, %v1403_v55  ;;  %v1353_v57 = vpop.f32.mrf.mxu3 }
 0x155   : > { %vm1475_vm12 = vcmp.ge.f32.partialorder %v1441_v56, 0.0  ;;  %v1509_v58 = vmul.f32 0.2, %v1441_v56 }
 0x156   : > { %v1123_v60 = vpop.f32.mrf.mxu2 }
 0x157   : > { %v1543_v61 = vsel %vm1475_vm12, %v1441_v56, %v1509_v58  ;;  %v1174_v62 = vadd.f32 %v1123_v60, %v705_v59  ;;  %v571_v63 = vpop.f32.mrf.mxu0  ;;  %v709_v0 = vpop.f32.mrf.mxu1 }
 0x158   : > { %1578 = vst.msk [vmem:[%s2107_s14 + $0xb0] sm:$0xff] %vm1555_vm4, %v1543_v61  ;;  %v708_v3 = vadd.f32 %v707_v54, %v571_v63 }
 0x159   : > { %v1404_v1 = vadd.f32 %v1353_v57, %v1174_v62 }
 0x15b   : > { %v1442_v2 = vadd.f32 %v2097_v33, %v1404_v1  ;;  %v1356_v4 = vpop.f32.mrf.mxu3 }
 0x15d   : > { %vm1476_vm13 = vcmp.ge.f32.partialorder %v1442_v2, 0.0  ;;  %v1510_v5 = vmul.f32 0.2, %v1442_v2 }
 0x15e   : > { %v1126_v6 = vpop.f32.mrf.mxu2 }
 0x15f   : > { %v1544_v7 = vsel %vm1476_vm13, %v1442_v2, %v1510_v5  ;;  %v1175_v9 = vadd.f32 %v1126_v6, %v708_v3  ;;  %v573_v10 = vpop.f32.mrf.mxu0  ;;  %v712_v8 = vpop.f32.mrf.mxu1 }
 0x160   : > { %1579 = vst.msk [vmem:[%s2107_s14 + $0xb8] sm:$0xff] %vm1555_vm4, %v1544_v7  ;;  %v710_v15 = vadd.f32 %v709_v0, %v573_v10 }
 0x161   : > { %v1405_v11 = vadd.f32 %v1356_v4, %v1175_v9  ;;  %v1932_v9 = vld [vmem:[%s2319_s2] ss:$0 sm:$0xff] }
 0x163   : > { %v1443_v12 = vadd.f32 %v2097_v33, %v1405_v11  ;;  %v1358_v13 = vpop.f32.mrf.mxu3 }
 0x165   : > { %vm1477_vm14 = vcmp.ge.f32.partialorder %v1443_v12, 0.0  ;;  %v1511_v14 = vmul.f32 0.2, %v1443_v12 }
 0x166   : > { %v1128_v16 = vpop.f32.mrf.mxu2 }
 0x167   : > { %v1545_v17 = vsel %vm1477_vm14, %v1443_v12, %v1511_v14  ;;  %v1176_v18 = vadd.f32 %v1128_v16, %v710_v15  ;;  %v576_v19 = vpop.f32.mrf.mxu0  ;;  %v714_v20 = vpop.f32.mrf.mxu1 }
 0x168   : > { %1580 = vst.msk [vmem:[%s2107_s14 + $0xc0] sm:$0xff] %vm1555_vm4, %v1545_v17  ;;  %v713_v23 = vadd.f32 %v712_v8, %v576_v19 }
 0x169   : > { %v1406_v21 = vadd.f32 %v1358_v13, %v1176_v18 }
 0x16b   : > { %v1444_v22 = vadd.f32 %v2097_v33, %v1406_v21  ;;  %v1361_v24 = vpop.f32.mrf.mxu3 }
 0x16d   : > { %vm1478_vm15 = vcmp.ge.f32.partialorder %v1444_v22, 0.0  ;;  %v1512_v25 = vmul.f32 0.2, %v1444_v22 }
 0x16e   : > { %v1131_v26 = vpop.f32.mrf.mxu2 }
 0x16f   : > { %v1546_v27 = vsel %vm1478_vm15, %v1444_v22, %v1512_v25  ;;  %v1177_v28 = vadd.f32 %v1131_v26, %v713_v23  ;;  %v578_v29 = vpop.f32.mrf.mxu0  ;;  %v717_v31 = vpop.f32.mrf.mxu1 }
 0x170   : > { %1581 = vst.msk [vmem:[%s2107_s14 + $0xc8] sm:$0xff] %vm1555_vm4, %v1546_v27  ;;  %v715_v36 = vadd.f32 %v714_v20, %v578_v29 }
 0x171   : > { %v1407_v30 = vadd.f32 %v1361_v24, %v1177_v28 }
 0x173   : > { %v1445_v32 = vadd.f32 %v2097_v33, %v1407_v30  ;;  %v1363_v34 = vpop.f32.mrf.mxu3 }
 0x175   : > { %vm1479_vm0 = vcmp.ge.f32.partialorder %v1445_v32, 0.0  ;;  %v1513_v35 = vmul.f32 0.2, %v1445_v32 }
 0x176   : > { %v1133_v37 = vpop.f32.mrf.mxu2 }
 0x177   : > { %v1547_v38 = vsel %vm1479_vm0, %v1445_v32, %v1513_v35  ;;  %v1178_v39 = vadd.f32 %v1133_v37, %v715_v36  ;;  %v581_v40 = vpop.f32.mrf.mxu0  ;;  %v719_v46 = vpop.f32.mrf.mxu1 }
 0x178   : > { %1582 = vst.msk [vmem:[%s2107_s14 + $0xd0] sm:$0xff] %vm1555_vm4, %v1547_v38  ;;  %v718_v44 = vadd.f32 %v717_v31, %v581_v40 }
 0x179   : > { %v1408_v41 = vadd.f32 %v1363_v34, %v1178_v39 }
 0x17b   : > { %v1446_v42 = vadd.f32 %v2097_v33, %v1408_v41  ;;  %v1366_v45 = vpop.f32.mrf.mxu3 }
 0x17d   : > { %vm1480_vm5 = vcmp.ge.f32.partialorder %v1446_v42, 0.0  ;;  %v1514_v43 = vmul.f32 0.2, %v1446_v42 }
 0x17e   : > { %v1136_v47 = vpop.f32.mrf.mxu2 }
 0x17f   : > { %v1548_v48 = vsel %vm1480_vm5, %v1446_v42, %v1514_v43  ;;  %v1179_v49 = vadd.f32 %v1136_v47, %v718_v44  ;;  %v583_v50 = vpop.f32.mrf.mxu0  ;;  %v722_v56 = vpop.f32.mrf.mxu1 }
 0x180   : > { %1583 = vst.msk [vmem:[%s2107_s14 + $0xd8] sm:$0xff] %vm1555_vm4, %v1548_v48  ;;  %v720_v55 = vadd.f32 %v719_v46, %v583_v50 }
 0x181   : > { %v1409_v51 = vadd.f32 %v1366_v45, %v1179_v49 }
 0x183   : > { %v1447_v52 = vadd.f32 %v2097_v33, %v1409_v51  ;;  %v1368_v53 = vpop.f32.mrf.mxu3 }
 0x185   : > { %vm1481_vm6 = vcmp.ge.f32.partialorder %v1447_v52, 0.0  ;;  %v1515_v54 = vmul.f32 0.2, %v1447_v52 }
 0x186   : > { %v1138_v57 = vpop.f32.mrf.mxu2 }
 0x187   : > { %v1549_v58 = vsel %vm1481_vm6, %v1447_v52, %v1515_v54  ;;  %v1180_v59 = vadd.f32 %v1138_v57, %v720_v55  ;;  %v586_v60 = vpop.f32.mrf.mxu0  ;;  %v724_v6 = vpop.f32.mrf.mxu1 }
 0x188   : > { %1584 = vst.msk [vmem:[%s2107_s14 + $0xe0] sm:$0xff] %vm1555_vm4, %v1549_v58  ;;  %v723_v63 = vadd.f32 %v722_v56, %v586_v60 }
 0x189   : > { %v1410_v61 = vadd.f32 %v1368_v53, %v1180_v59 }
 0x18b   : > { %v1448_v62 = vadd.f32 %v2097_v33, %v1410_v61  ;;  %v1371_v0 = vpop.f32.mrf.mxu3 }
 0x18d   : > { %vm1482_vm7 = vcmp.ge.f32.partialorder %v1448_v62, 0.0  ;;  %v1516_v1 = vmul.f32 0.2, %v1448_v62 }
 0x18e   : > { %v1141_v2 = vpop.f32.mrf.mxu2 }
 0x18f   : > { %v1550_v3 = vsel %vm1482_vm7, %v1448_v62, %v1516_v1  ;;  %v1181_v4 = vadd.f32 %v1141_v2, %v723_v63  ;;  %v588_v5 = vpop.f32.mrf.mxu0  ;;  %v727_v17 = vpop.f32.mrf.mxu1 }
 0x190   : > { %1585 = vst.msk [vmem:[%s2107_s14 + $0xe8] sm:$0xff] %vm1555_vm4, %v1550_v3  ;;  %v725_v11 = vadd.f32 %v724_v6, %v588_v5 }
 0x191   : > { %v1411_v7 = vadd.f32 %v1371_v0, %v1181_v4 }
 0x193   : > { %v1449_v10 = vadd.f32 %v1932_v9, %v1411_v7  ;;  %v1373_v8 = vpop.f32.mrf.mxu3 }
 0x195   : > { %vm1483_vm2 = vcmp.ge.f32.partialorder %v1449_v10, 0.0  ;;  %v1517_v33 = vmul.f32 0.2, %v1449_v10 }
 0x196   : > { %v1143_v12 = vpop.f32.mrf.mxu2 }
 0x197   : > { %v1551_v13 = vsel %vm1483_vm2, %v1449_v10, %v1517_v33  ;;  %v1182_v14 = vadd.f32 %v1143_v12, %v725_v11  ;;  %v591_v15 = vpop.f32.mrf.mxu0  ;;  %v729_v28 = vpop.f32.mrf.mxu1 }
 0x198   : > { %1586 = vst.msk [vmem:[%s2107_s14 + $0xf0] sm:$0xff] %vm1555_vm4, %v1551_v13  ;;  %v728_v19 = vadd.f32 %v727_v17, %v591_v15 }
 0x199   : > { %v1412_v16 = vadd.f32 %v1373_v8, %v1182_v14 }
 0x19b   : > { %v1450_v18 = vadd.f32 %v1932_v9, %v1412_v16  ;;  %v1376_v21 = vpop.f32.mrf.mxu3 }
 0x19d   : > { %vm1484_vm3 = vcmp.ge.f32.partialorder %v1450_v18, 0.0  ;;  %v1518_v20 = vmul.f32 0.2, %v1450_v18 }
 0x19e   : > { %v1146_v22 = vpop.f32.mrf.mxu2 }
 0x19f   : > { %v1552_v23 = vsel %vm1484_vm3, %v1450_v18, %v1518_v20  ;;  %v1183_v24 = vadd.f32 %v1146_v22, %v728_v19  ;;  %v593_v26 = vpop.f32.mrf.mxu0 }
 0x1a0   : > { %1587 = vst.msk [vmem:[%s2107_s14 + $0xf8] sm:$0xff] %vm1555_vm4, %v1552_v23  ;;  %v730_v30 = vadd.f32 %v729_v28, %v593_v26 }
 0x1a1   : > { %v1413_v25 = vadd.f32 %v1376_v21, %v1183_v24 }
 0x1a3   : > { %v1451_v27 = vadd.f32 %v1932_v9, %v1413_v25  ;;  %v1378_v35 = vpop.f32.mrf.mxu3 }
 0x1a5   : > { %vm1485_vm1 = vcmp.ge.f32.partialorder %v1451_v27, 0.0  ;;  %v1519_v29 = vmul.f32 0.2, %v1451_v27 }
 0x1a6   : > { %v1148_v31 = vpop.f32.mrf.mxu2 }
 0x1a7   : > { %v1553_v32 = vsel %vm1485_vm1, %v1451_v27, %v1519_v29  ;;  %v1184_v34 = vadd.f32 %v1148_v31, %v730_v30 }
 0x1a8   : > { %1588 = vst.msk [vmem:[%s2107_s14 + $0x100] sm:$0xff] %vm1555_vm4, %v1553_v32 }
 0x1a9   : > { %v1414_v36 = vadd.f32 %v1378_v35, %v1184_v34 }
 0x1ab   : > { %v1452_v37 = vadd.f32 %v1932_v9, %v1414_v36 }
 0x1ad   : > { %vm1486_vm8 = vcmp.ge.f32.partialorder %v1452_v37, 0.0  ;;  %v1520_v38 = vmul.f32 0.2, %v1452_v37 }
 0x1af   : > { %v1554_v39 = vsel %vm1486_vm8, %v1452_v37, %v1520_v38 }
 0x1b0   : > { %1589 = vst.msk [vmem:[%s2107_s14 + $0x108] sm:$0xff] %vm1555_vm4, %v1554_v39 }
 0x1b1 PF: > { %s13_s12 = sadd.s32 1, %s1939_s12  }
 0x1b2   : > { %p10_p4 = scmp.ge.s32.totalorder %s13_s12, 4  }
 0x1b4   :  { %12 = sbr.rel (!%p10_p4) target bundleno = 1 (0x1), region = 65 }

</bundles_post_ra>
